<compile_context>
chip_gen: v6e
topology: v6e:2x2x1
jax: 0.10.0
libtpu: 0.0.40
codegen_flags: <defaults>
</compile_context>

<pallas_src>
import jax
import jax.numpy as jnp
from jax.experimental import pallas as pl
from jax.experimental.pallas import tpu as pltpu


def _round_up(a: int, b: int) -> int:
    return ((a + b - 1) // b) * b


def _affine_pairs_kernel(b_ref, x_ref, wp_ref, o_ref):
    """o = x @ Wp + b.

    x_ref : (TG, 256) f32 VMEM — 128 batch rows per group-row, features interleaved
            on lanes (lane 2j = x[row j, 0], lane 2j+1 = x[row j, 1]).
    wp_ref: (256, 128) f32 VMEM — pairing weights, wp[2j, j] = w0, wp[2j+1, j] = w1.
    o_ref : (TG, 128) f32 VMEM — lane j = y[row j]  (lane-dense, unmasked stores).
    b_ref : (1,) f32 SMEM — collapsed bias scalar.
    """
    y = jnp.dot(
        x_ref[...], wp_ref[...],
        preferred_element_type=jnp.float32,
        precision=jax.lax.Precision.HIGHEST,
    )
    o_ref[...] = y + b_ref[0]


@jax.jit
def circle_model_v3(x, params):
    """x: (N, 2) float32 -> (N, 1) float32 (same forward as the PyTorch module)."""
    w1, b1, w2, b2, w3, b3 = params

    # ---- exact collapse of the 3 affine layers (no activation in the module) ----
    w_eff = (w1 @ w2 @ w3).astype(jnp.float32)                 # (2, 1)
    b_eff = ((b1 @ w2 + b2) @ w3 + b3).astype(jnp.float32)     # (1, 1)

    # Pairing matrix: 128 batch rows per 256-lane group -> one lane-dense 128-wide out.
    wp = jnp.kron(jnp.eye(128, dtype=jnp.float32), w_eff)      # (256, 128)
    b_arr = b_eff.reshape(1)                                   # (1,) SMEM scalar

    n = x.shape[0]
    n_pad = _round_up(max(n, 1), 128)
    xf = x.astype(jnp.float32)
    if n_pad != n:
        # Only the ragged case pays a pad/copy pass; 128-aligned batches are free views.
        xf = jnp.pad(xf, ((0, n_pad - n), (0, 0)))
    g = n_pad // 128
    xg = xf.reshape(g, 256)        # free reshape of the contiguous (N_pad, 2) buffer

    # Tile the group-rows: ~4 MiB input / 2 MiB output per step, >=2 steps when big
    # enough so the "parallel" axis shards across v7x's two TensorCores.
    if g <= 8:
        tg = g                                            # single full block
    else:
        tg = min(4096, _round_up(pl.cdiv(g, 2), 8))
    grid = pl.cdiv(g, tg)                                 # partial last block handled

    flops = 2 * g * 256 * 128 + n_pad
    bytes_accessed = n_pad * 8 + n_pad * 4 + 256 * 128 * 4 + 4

    out = pl.pallas_call(
        _affine_pairs_kernel,
        out_shape=jax.ShapeDtypeStruct((g, 128), jnp.float32),
        grid=(grid,),
        in_specs=[
            pl.BlockSpec(memory_space=pltpu.MemorySpace.SMEM),   # bias scalar
            pl.BlockSpec((tg, 256), lambda i: (i, 0)),           # batch tile (lane-dense)
            pl.BlockSpec((256, 128), lambda i: (0, 0)),          # resident pairing weights
        ],
        out_specs=pl.BlockSpec((tg, 128), lambda i: (i, 0)),     # lane-dense output
        compiler_params=pltpu.CompilerParams(
            dimension_semantics=("parallel",),
            vmem_limit_bytes=32 * 1024 * 1024,
        ),
        cost_estimate=pl.CostEstimate(
            flops=flops, transcendentals=0, bytes_accessed=bytes_accessed),
    )(b_arr, xg, wp)

    y = out.reshape(-1)            # already in original row order
    if n != n_pad:
        y = y[:n]                  # no-op (elided) when N is 128-aligned
    return y.reshape(n, 1)


def init_params(key):
    """Deterministic init mimicking nn.Linear default U(-1/sqrt(fan_in), +)."""
    def linear(k, fan_in, fan_out):
        kw, kb = jax.random.split(k)
        bound = 1.0 / jnp.sqrt(float(fan_in))
        # stored as (in, out) so forward is x @ W + b (== PyTorch x @ W.T + b)
        w = jax.random.uniform(kw, (fan_in, fan_out), jnp.float32, -bound, bound)
        b = jax.random.uniform(kb, (1, fan_out), jnp.float32, -bound, bound)
        return w, b

    k1, k2, k3 = jax.random.split(key, 3)
    w1, b1 = linear(k1, 2, 10)
    w2, b2 = linear(k2, 10, 10)
    w3, b3 = linear(k3, 10, 1)
    return (w1, b1, w2, b2, w3, b3)


if __name__ == "__main__":
    key = jax.random.PRNGKey(0)
    k_params, k_x = jax.random.split(key)

    params = init_params(k_params)
    x = jax.random.normal(k_x, (8, 2), dtype=jnp.float32)  # batch=8, in_features=2

    out = jax.block_until_ready(circle_model_v3(x, params))

    # reference check: plain-JAX 3-layer forward (identical semantics)
    w1, b1, w2, b2, w3, b3 = params
    ref = ((x @ w1 + b1) @ w2 + b2) @ w3 + b3
    assert out.shape == (8, 1)
    assert jnp.allclose(out, ref, rtol=1e-5, atol=1e-5), "mismatch vs reference"

    print("KERNEL_OK")
</pallas_src>

<mosaic_0001>
module attributes {stable_mosaic.version = 11 : i64} {
  func.func @_affine_pairs_kernel(%arg0: i32, %arg1: memref<1xf32, #tpu.memory_space<smem>>, %arg2: memref<1x256xf32, #tpu.memory_space<vmem>>, %arg3: memref<256x128xf32, #tpu.memory_space<vmem>>, %arg4: memref<1x128xf32, #tpu.memory_space<vmem>>) attributes {dimension_semantics = [#tpu.dimension_semantics<parallel>], iteration_bounds = array<i64: 1>, scalar_prefetch = 0 : i64, scratch_operands = 0 : i64, tpu.core_type = #tpu.core_type<tc>, window_params = [{transform_indices = @transform_0, window_bounds = array<i64: 1>}, {transform_indices = @transform_1, window_bounds = array<i64: 1, 256>}, {pipeline_mode = #tpu.pipeline_mode<synchronous>, transform_indices = @transform_2, window_bounds = array<i64: 256, 128>}, {transform_indices = @transform_3, window_bounds = array<i64: 1, 128>}]} {
    %c0 = arith.constant 0 : index
    %c0_0 = arith.constant 0 : index
    %0 = vector.load %arg2[%c0, %c0_0] : memref<1x256xf32, #tpu.memory_space<vmem>>, vector<1x256xf32>
    %c0_1 = arith.constant 0 : index
    %c0_2 = arith.constant 0 : index
    %1 = vector.load %arg3[%c0_1, %c0_2] : memref<256x128xf32, #tpu.memory_space<vmem>>, vector<256x128xf32>
    %cst = arith.constant dense<0.000000e+00> : vector<1x128xf32>
    %2 = tpu.matmul %0, %1, %cst {dimension_numbers = #tpu.dot_dimension_numbers<[1], [0], [0], [1], [0, 0, 1, 1], [], []>, precision = #tpu.contract_precision<fp32>} : vector<1x256xf32>, vector<256x128xf32>, vector<1x128xf32> -> vector<1x128xf32>
    %c0_3 = arith.constant 0 : index
    %3 = memref.load %arg1[%c0_3] : memref<1xf32, #tpu.memory_space<smem>>
    %4 = vector.broadcast %3 : f32 to vector<1x128xf32>
    %5 = arith.addf %2, %4 : vector<1x128xf32>
    %c0_4 = arith.constant 0 : index
    %c0_5 = arith.constant 0 : index
    %6 = vector.load %arg4[%c0_4, %c0_5] : memref<1x128xf32, #tpu.memory_space<vmem>>, vector<1x128xf32>
    tpu.vector_store %arg4[%c0_4, %c0_5], %5 {strides = array<i32>} : memref<1x128xf32, #tpu.memory_space<vmem>>, vector<1x128xf32>,
    return
  }
  func.func @transform_0(%arg0: i32) -> i32 {
    %c0_i32 = arith.constant 0 : i32
    %c0_i32_0 = arith.constant 0 : i32
    return %c0_i32 : i32
  }
  func.func @transform_1(%arg0: i32) -> (i32, i32) {
    %c0_i32 = arith.constant 0 : i32
    %c0_i32_0 = arith.constant 0 : i32
    return %arg0, %c0_i32 : i32, i32
  }
  func.func @transform_2(%arg0: i32) -> (i32, i32) {
    %c0_i32 = arith.constant 0 : i32
    %c0_i32_0 = arith.constant 0 : i32
    %c0_i32_1 = arith.constant 0 : i32
    return %c0_i32, %c0_i32_0 : i32, i32
  }
  func.func @transform_3(%arg0: i32) -> (i32, i32) {
    %c0_i32 = arith.constant 0 : i32
    %c0_i32_0 = arith.constant 0 : i32
    return %arg0, %c0_i32 : i32, i32
  }
}

</mosaic_0001>

<bundles_post_ra>
// kernel: circle_model_v3.1
= control target key start
LH: loop header
LB: loop body
LE: loop exit
PB: predicated region body
PF: predicated region fallthrough
CT: control target
= control target key end

     0   :  { %s1870_s2 = inlined_call_operand.vmem [shape: f32[256,128], index: 2, kind: input, shape index: {}]   ;;  %s1871_s1 = inlined_call_operand.vmem [shape: f32[1,256], index: 1, kind: input, shape index: {}]   ;;  %s1872_s0 = inlined_call_operand.<no memory space> [shape: f32[1], index: 0, kind: input, shape index: {}]   ;;  %s1873_s3 = inlined_call_operand.vmem [shape: f32[1,128], index: 3, kind: output, shape index: {}]  }
   0x1   :  { %v47_v0 = vld [vmem:[%s1870_s2 + $0xf8] sm:$0xff]  ;;  %v46_v2 = vld [vmem:[%s1870_s2 + $0xf0] sm:$0xff]  ;;  %v45_v7 = vld [vmem:[%s1870_s2 + $0xe8] sm:$0xff] }
   0x2   :  { %v31_v1 = vld [vmem:[%s1870_s2 + $0x78] sm:$0xff]  ;;  %v1167_v3 = vand.u32 4294901760, %v47_v0  ;;  %v1171_v5 = vand.u32 4294901760, %v46_v2  ;;  %v30_v6 = vld [vmem:[%s1870_s2 + $0x70] sm:$0xff]  ;;  %v29_v8 = vld [vmem:[%s1870_s2 + $0x68] sm:$0xff]  ;;  %v1184_v10 = vand.u32 4294901760, %v45_v7 }
   0x3   :  { %v1169_v4 = vand.u32 4294901760, %v31_v1  ;;  %v1182_v9 = vand.u32 4294901760, %v30_v6  ;;  %v1186_v11 = vand.u32 4294901760, %v29_v8  ;;  %v44_v12 = vld [vmem:[%s1870_s2 + $0xe0] sm:$0xff]  ;;  %v1197_v14 = vld [vmem:[%s1870_s2 + $0xd8] sm:$0xff]  ;;  %v1218_v21 = vld [vmem:[%s1870_s2 + $0xd0] sm:$0xff] }
   0x4   :  { %v28_v13 = vld [vmem:[%s1870_s2 + $0x60] sm:$0xff]  ;;  %928 = vmatprep.subr.mxu0 %v1167_v3  ;;  %v1200_v16 = vand.u32 4294901760, %v44_v12  ;;  %v1205_v18 = vand.u32 4294901760, %v1197_v14  ;;  %v1208_v19 = vsub.f32 %v47_v0, %v1167_v3  ;;  %v1213_v20 = vld [vmem:[%s1870_s2 + $0x58] sm:$0xff]  ;;  %v1223_v22 = vld [vmem:[%s1870_s2 + $0x50] sm:$0xff]  ;;  %v1233_v25 = vand.u32 4294901760, %v1218_v21 }
   0x5   :  { %v1202_v17 = vand.u32 4294901760, %v28_v13  ;;  %929 = vmatpush3.msra.mxu0 %v1169_v4  ;;  %v1227_v23 = vand.u32 4294901760, %v1213_v20  ;;  %v1230_v24 = vsub.f32 %v31_v1, %v1169_v4  ;;  %v1236_v26 = vsub.f32 %v46_v2, %v1171_v5  ;;  %v1241_v27 = vld [vmem:[%s1870_s2 + $0xc8] sm:$0xff]  ;;  %v1251_v29 = vld [vmem:[%s1870_s2 + $0xc0] sm:$0xff]  ;;  %v1303_v47 = vld [vmem:[%s1870_s2 + $0xb8] sm:$0xff] }
   0x6   :  { %v1246_v28 = vld [vmem:[%s1870_s2 + $0x48] sm:$0xff]  ;;  %930 = vmatprep.subr.mxu0 %v1171_v5  ;;  %v1887_v30 = vand.u32 4294901760, %v1208_v19  ;;  %v1256_v31 = vand.u32 4294901760, %v1223_v22  ;;  %v1259_v32 = vsub.f32 %v30_v6, %v1182_v9  ;;  %v1262_v33 = vand.u32 4294901760, %v1241_v27  ;;  %v1276_v38 = vld [vmem:[%s1870_s2 + $0x40] sm:$0xff]  ;;  %v1316_v52 = vld [vmem:[%s1870_s2 + $0x38] sm:$0xff] }
   0x7   :  { %931 = vmatpush3.msra.mxu0 %v1182_v9  ;;  %v1885_v34 = vand.u32 4294901760, %v1230_v24  ;;  %v1884_v35 = vand.u32 4294901760, %v1236_v26  ;;  %v1268_v36 = vsub.f32 %v45_v7, %v1184_v10  ;;  %v1271_v37 = vand.u32 4294901760, %v1246_v28  ;;  %v1326_v57 = vld [vmem:[%s1870_s2 + $0xb0] sm:$0xff]  ;;  %v1357_v6 = vld [vmem:[%s1870_s2 + $0xa8] sm:$0xff] }
   0x8   :  { %932 = vmatprep.subr.mxu0 %v1184_v10  ;;  %v289_v39 = vsub.f32 %v1208_v19, %v1887_v30  ;;  %v1882_v40 = vand.u32 4294901760, %v1259_v32  ;;  %v1284_v41 = vsub.f32 %v29_v8, %v1186_v11  ;;  %v1287_v42 = vand.u32 4294901760, %v1251_v29  ;;  %v1341_v62 = vld [vmem:[%s1870_s2 + $0x30] sm:$0xff]  ;;  %v1493_v30 = vld [vmem:[%s1870_s2 + $0x88] sm:$0xff] }
   0x9   :  { %933 = vmatpush3.msra.mxu0 %v1186_v11  ;;  %v177_v43 = vsub.f32 %v1230_v24, %v1885_v34  ;;  %v296_v44 = vsub.f32 %v1236_v26, %v1884_v35  ;;  %v1880_v45 = vand.u32 4294901760, %v1268_v36  ;;  %v1298_v46 = vsub.f32 %v44_v12, %v1200_v16 }
   0xa   :  { %1948 = vst [vmem:[#allocation3_spill] sm:$0xff] %v1287_v42  ;;  %934 = vmatprep.subr.mxu0 %v1200_v16  ;;  %v290_v48 = vand.u32 4294901760, %v289_v39  ;;  %v184_v49 = vsub.f32 %v1259_v32, %v1882_v40  ;;  %v1879_v50 = vand.u32 4294901760, %v1284_v41  ;;  %v1311_v51 = vand.u32 4294901760, %v1276_v38  ;;  %v1466_v40 = vld [vmem:[%s1870_s2 + $0x90] sm:$0xff] }
   0xb   :  { %935 = vmatpush3.msra.mxu0 %v1202_v17  ;;  %v178_v53 = vand.u32 4294901760, %v177_v43  ;;  %v297_v54 = vand.u32 4294901760, %v296_v44  ;;  %v303_v55 = vsub.f32 %v1268_v36, %v1880_v45  ;;  %v1877_v56 = vand.u32 4294901760, %v1298_v46  ;;  %v1450_v45 = vld [vmem:[%s1870_s2 + $0x18] sm:$0xff] }
   0xc   :  { %1949 = vst [vmem:[#allocation4_spill] sm:$0xff] %v1311_v51  ;;  %936 = vmatprep.subr.mxu0 %v1205_v18  ;;  %963 = vmatprep.subr.mxu1 %v290_v48  ;;  %v185_v58 = vand.u32 4294901760, %v184_v49  ;;  %v191_v59 = vsub.f32 %v1284_v41, %v1879_v50  ;;  %v1333_v60 = vsub.f32 %v28_v13, %v1202_v17  ;;  %v1336_v61 = vand.u32 4294901760, %v1303_v47 }
   0xd   :  { %937 = vmatpush3.msra.mxu0 %v1227_v23  ;;  %964 = vmatpush3.msra.mxu1 %v178_v53  ;;  %v304_v63 = vand.u32 4294901760, %v303_v55  ;;  %v310_v0 = vsub.f32 %v1298_v46, %v1877_v56  ;;  %v1349_v1 = vsub.f32 %v1197_v14, %v1205_v18  ;;  %v1352_v2 = vand.u32 4294901760, %v1316_v52  ;;  %v1371_v14 = vld [vmem:[%s1870_s2 + $0x28] sm:$0xff] }
   0xe   :  { %1950 = vst [vmem:[#allocation5_spill] sm:$0xff] %v1336_v61  ;;  %938 = vmatprep.subr.mxu0 %v1233_v25  ;;  %965 = vmatprep.subr.mxu1 %v297_v54  ;;  %v192_v7 = vand.u32 4294901760, %v191_v59  ;;  %v1875_v8 = vand.u32 4294901760, %v1333_v60  ;;  %v1363_v12 = vsub.f32 %v1213_v20, %v1227_v23  ;;  %v1366_v13 = vand.u32 4294901760, %v1326_v57 }
   0xf   :  { %1951 = vst [vmem:[#allocation6_spill] sm:$0xff] %v1352_v2  ;;  %939 = vmatpush3.msra.mxu0 %v1256_v31  ;;  %966 = vmatpush3.msra.mxu1 %v185_v58  ;;  %v311_v39 = vand.u32 4294901760, %v310_v0  ;;  %v1874_v43 = vand.u32 4294901760, %v1349_v1  ;;  %v1377_v44 = vsub.f32 %v1218_v21, %v1233_v25  ;;  %v1380_v20 = vand.u32 4294901760, %v1341_v62  ;;  %v1397_v21 = vld [vmem:[%s1870_s2 + $0xa0] sm:$0xff] }
  0x10   :  { %1952 = vst [vmem:[#allocation7_spill] sm:$0xff] %v1366_v13  ;;  %940 = vmatprep.subr.mxu0 %v1262_v33  ;;  %967 = vmatprep.subr.mxu1 %v304_v63  ;;  %v198_v48 = vsub.f32 %v1333_v60, %v1875_v8  ;;  %v1876_v49 = vand.u32 4294901760, %v1363_v12  ;;  %v1389_v53 = vsub.f32 %v1223_v22, %v1256_v31  ;;  %v1392_v54 = vand.u32 4294901760, %v1357_v6 }
  0x11   :  { %1953 = vst [vmem:[#allocation8_spill] sm:$0xff] %v1380_v20  ;;  %941 = vmatpush3.msra.mxu0 %v1271_v37  ;;  %968 = vmatpush3.msra.mxu1 %v192_v7  ;;  %v317_v55 = vsub.f32 %v1349_v1, %v1874_v43  ;;  %v1878_v58 = vand.u32 4294901760, %v1377_v44  ;;  %v1406_v22 = vsub.f32 %v1241_v27, %v1262_v33  ;;  %v1409_v59 = vand.u32 4294901760, %v1371_v14  ;;  %v1423_v27 = vld [vmem:[%s1870_s2 + $0x20] sm:$0xff] }
  0x12   :  { %1954 = vst [vmem:[#allocation9_spill] sm:$0xff] %v1392_v54  ;;  %942 = vmatprep.subr.mxu0 %v1287_v42  ;;  %969 = vmatprep.subr.mxu1 %v311_v39  ;;  %v199_v63 = vand.u32 4294901760, %v198_v48  ;;  %v205_v0 = vsub.f32 %v1363_v12, %v1876_v49  ;;  %v1881_v7 = vand.u32 4294901760, %v1389_v53  ;;  %v1418_v43 = vsub.f32 %v1246_v28, %v1271_v37  ;;  %v1436_v28 = vld [vmem:[%s1870_s2 + $0x98] sm:$0xff] }
  0x13   :  { %1955 = vst [vmem:[#allocation10_spill] sm:$0xff] %v1409_v59  ;;  %943 = vmatpush3.msra.mxu0 %v1311_v51  ;;  %v318_v8 = vand.u32 4294901760, %v317_v55  ;;  %v324_v39 = vsub.f32 %v1377_v44, %v1878_v58  ;;  %v1883_v48 = vand.u32 4294901760, %v1406_v22  ;;  %v1431_v49 = vand.u32 4294901760, %v1397_v21 }
  0x14   :  { %970 = vmatpush3.msra.mxu1 %v199_v63  ;;  %944 = vmatprep.subr.mxu0 %v1336_v61  ;;  %v206_v56 = vand.u32 4294901760, %v205_v0  ;;  %v212_v55 = vsub.f32 %v1389_v53, %v1881_v7  ;;  %v1886_v58 = vand.u32 4294901760, %v1418_v43  ;;  %v1445_v50 = vsub.f32 %v1251_v29, %v1287_v42 }
  0x15   :  { %1956 = vst [vmem:[#allocation11_spill] sm:$0xff] %v1431_v49  ;;  %971 = vmatprep.subr.mxu1 %v318_v8  ;;  %945 = vmatpush3.msra.mxu0 %v1352_v2  ;;  %v325_v63 = vand.u32 4294901760, %v324_v39  ;;  %v331_v0 = vsub.f32 %v1406_v22, %v1883_v48  ;;  %v1457_v7 = vand.u32 4294901760, %v1423_v27  ;;  %v1461_v29 = vsub.f32 %v1276_v38, %v1311_v51  ;;  %v1479_v38 = vld [vmem:[%s1870_s2 + $0x10] sm:$0xff] }
  0x16   :  { %972 = vmatpush3.msra.mxu1 %v206_v56  ;;  %946 = vmatprep.subr.mxu0 %v1366_v13  ;;  %v213_v8 = vand.u32 4294901760, %v212_v55  ;;  %v219_v39 = vsub.f32 %v1418_v43, %v1886_v58  ;;  %v1890_v48 = vand.u32 4294901760, %v1445_v50  ;;  %v1474_v35 = vand.u32 4294901760, %v1436_v28 }
  0x17   :  { %1957 = vst [vmem:[#allocation12_spill] sm:$0xff] %v1457_v7  ;;  %973 = vmatprep.subr.mxu1 %v325_v63  ;;  %947 = vmatpush3.msra.mxu0 %v1380_v20  ;;  %v332_v56 = vand.u32 4294901760, %v331_v0  ;;  %v1891_v55 = vand.u32 4294901760, %v1461_v29  ;;  %v1485_v34 = vsub.f32 %v1303_v47, %v1336_v61  ;;  %v1488_v58 = vand.u32 4294901760, %v1450_v45 }
  0x18   :  { %1958 = vst [vmem:[#allocation13_spill] sm:$0xff] %v1474_v35  ;;  %974 = vmatpush3.msra.mxu1 %v213_v8  ;;  %948 = vmatprep.subr.mxu0 %v1392_v54  ;;  %v220_v63 = vand.u32 4294901760, %v219_v39  ;;  %v338_v0 = vsub.f32 %v1445_v50, %v1890_v48  ;;  %v1501_v47 = vsub.f32 %v1316_v52, %v1352_v2  ;;  %v1504_v15 = vand.u32 4294901760, %v1466_v40  ;;  %v1521_v52 = vld [vmem:[%s1870_s2 + $0x8] sm:$0xff] }
  0x19   :  { %1959 = vst [vmem:[#allocation14_spill] sm:$0xff] %v1488_v58  ;;  %975 = vmatprep.subr.mxu1 %v332_v56  ;;  %949 = vmatpush3.msra.mxu0 %v1409_v59  ;;  %v226_v8 = vsub.f32 %v1461_v29, %v1891_v55  ;;  %v1513_v61 = vsub.f32 %v1326_v57, %v1366_v13  ;;  %v1516_v48 = vand.u32 4294901760, %v1479_v38  ;;  %v1530_v57 = vand.u32 4294901760, %v1493_v30  ;;  %v1535_v13 = vld [vmem:[%s1870_s2 + $0x80] sm:$0xff] }
  0x1a   :  { %1960 = vst [vmem:[#allocation15_spill] sm:$0xff] %v1501_v47  ;;  %1961 = vst [vmem:[#allocation16_spill] sm:$0xff] %v1504_v15  ;;  %976 = vmatpush3.msra.mxu1 %v220_v63  ;;  %950 = vmatprep.subr.mxu0 %v1431_v49  ;;  %v339_v56 = vand.u32 4294901760, %v338_v0  ;;  %v1527_v39 = vsub.f32 %v1341_v62, %v1380_v20  ;;  %v1966_v2 = vand.u32 4294901760, %v1485_v34  ;;  %v1968_v20 = vand.u32 4294901760, %v1501_v47 }
  0x1b   :  { %1962 = vst [vmem:[#allocation17_spill] sm:$0xff] %v1513_v61  ;;  %1963 = vst [vmem:[#allocation18_spill] sm:$0xff] %v1516_v48  ;;  %951 = vmatpush3.msra.mxu0 %v1457_v7  ;;  %v227_v63 = vand.u32 4294901760, %v226_v8  ;;  %v1908_v55 = vand.u32 4294901760, %v1513_v61  ;;  %v1544_v62 = vsub.f32 %v1357_v6, %v1392_v54  ;;  %v1552_v8 = vand.u32 4294901760, %v1521_v52  ;;  %v1561_v6 = vld [vmem:[%s1870_s2] sm:$0xff] }
  0x1c   :  { %1964 = vst [vmem:[#allocation19_spill] sm:$0xff] %v1527_v39  ;;  %1965 = vst [vmem:[#allocation20_spill] sm:$0xff] %v1530_v57  ;;  %v345_v0 = vsub.f32 %v1485_v34, %v1966_v2  ;;  %977 = vmatprep.subr.mxu1 %v339_v56  ;;  %952 = vmatprep.subr.mxu0 %v1474_v35  ;;  %v233_v51 = vsub.f32 %v1501_v47, %v1968_v20  ;;  %v1569_v54 = vand.u32 4294901760, %v1535_v13 }
  0x1d   :  { %1967 = vst [vmem:[#allocation21_spill] sm:$0xff] %v1544_v62  ;;  %1969 = vst [vmem:[#allocation22_spill] sm:$0xff] %v1552_v8  ;;  %v1556_v2 = vsub.f32 %v1371_v14, %v1409_v59  ;;  %978 = vmatpush3.msra.mxu1 %v227_v63  ;;  %953 = vmatpush3.msra.mxu0 %v1488_v58  ;;  %v352_v20 = vsub.f32 %v1513_v61, %v1908_v55  ;;  %v1915_v42 = vand.u32 4294901760, %v1544_v62 }
  0x1e   :  { %v346_v56 = vand.u32 4294901760, %v345_v0  ;;  %1970 = vst [vmem:[#allocation23_spill] sm:$0xff] %v1569_v54  ;;  %v234_v14 = vand.u32 4294901760, %v233_v51  ;;  %954 = vmatprep.subr.mxu0 %v1504_v15  ;;  %v1971_v59 = vand.u32 4294901760, %v1527_v39  ;;  %v1578_v0 = vsub.f32 %v1397_v21, %v1431_v49 }
  0x1f   :  { %v353_v55 = vand.u32 4294901760, %v352_v20  ;;  %955 = vmatpush3.msra.mxu0 %v1516_v48  ;;  %v359_v51 = vsub.f32 %v1544_v62, %v1915_v42  ;;  %v1585_v61 = vand.u32 4294901760, %v1561_v6  ;;  %v1973_v21 = vand.u32 4294901760, %v1556_v2 }
  0x20   :  { %v240_v47 = vsub.f32 %v1527_v39, %v1971_v59  ;;  %979 = vmatprep.subr.mxu1 %v346_v56  ;;  %v1589_v59 = vsub.f32 %v1423_v27, %v1457_v7  ;;  %956 = vmatprep.subr.mxu0 %v1530_v57  ;;  %v1920_v20 = vand.u32 4294901760, %v1578_v0  ;;  %v1974_v49 = vlaneseq  ;;  %v15_v27 = vld [vmem:[%s1871_s1] sm:$0x3] }
  0x21   :  { %1972 = vst [vmem:[#allocation24_spill] sm:$0xff] %v1585_v61  ;;  %980 = vmatpush3.msra.mxu1 %v234_v14  ;;  %v247_v56 = vsub.f32 %v1556_v2, %v1973_v21  ;;  %v360_v42 = vand.u32 4294901760, %v359_v51  ;;  %957 = vmatpush3.msra.mxu0 %v1552_v8  ;;  %v1608_v14 = vsub.f32 %v1450_v45, %v1488_v58 }
  0x22   :  { %v241_v63 = vand.u32 4294901760, %v240_v47  ;;  %v52_v39 = vshrl.u32 %v1974_v49, 7  ;;  %981 = vmatprep.subr.mxu1 %v353_v55  ;;  %v1923_v62 = vand.u32 4294901760, %v1589_v59  ;;  %v1604_v47 = vsub.f32 %v1436_v28, %v1474_v35  ;;  %958 = vmatprep.subr.mxu0 %v1569_v54 }
  0x23   :  { %v248_v49 = vand.u32 4294901760, %v247_v56  ;;  %v366_v55 = vsub.f32 %v1578_v0, %v1920_v20  ;;  %959 = vmatpush3.msra.mxu0 %v1585_v61  ;;  %v1622_v56 = vsub.f32 %v1466_v40, %v1504_v15 }
  0x24   :  { %982 = vmatpush3.msra.mxu1 %v241_v63  ;;  %v53_v51 = vsub.s32 0, %v52_v39  ;;  %v57_v21 = vsub.s32 1, %v52_v39  ;;  %v254_v28 = vsub.f32 %v1589_v59, %v1923_v62  ;;  %v1925_v45 = vand.u32 4294901760, %v1604_v47  ;;  %998 = vmatprep.subr.mxu0 %v1208_v19 }
  0x25   :  { %983 = vmatprep.subr.mxu1 %v360_v42  ;;  %v1924_v63 = vand.u32 4294901760, %v1608_v14  ;;  %v367_v58 = vand.u32 4294901760, %v366_v55  ;;  %v1627_v42 = vsub.f32 %v1479_v38, %v1516_v48  ;;  %v1643_v38 = vsub.f32 %v1493_v30, %v1530_v57 }
  0x26   :  { %984 = vmatpush3.msra.mxu1 %v248_v49  ;;  %v54_v20 = vrot.slane %v15_v27, %v53_v51  ;;  %v58_v35 = vrot.slane %v15_v27, %v57_v21  ;;  %v255_v39 = vand.u32 4294901760, %v254_v28  ;;  %v373_v62 = vsub.f32 %v1604_v47, %v1925_v45 }
  0x27   :  { %v261_v40 = vsub.f32 %v1608_v14, %v1924_v63  ;;  %v1926_v49 = vand.u32 4294901760, %v1622_v56  ;;  %985 = vmatprep.subr.mxu1 %v367_v58  ;;  %v1650_v58 = vsub.f32 %v1521_v52, %v1552_v8  ;;  %v1977_v30 = vand.u32 4294901760, %v1627_v42 }
  0x28   :  { %v1636_v55 = vand.u32 4294901760, %v58_v35  ;;  %v1638_v27 = vand.u32 4294901760, %v54_v20  ;;  %986 = vmatpush3.msra.mxu1 %v255_v39  ;;  %v374_v21 = vand.u32 4294901760, %v373_v62  ;;  %v1666_v52 = vsub.f32 %v1535_v13, %v1569_v54 }
  0x29   :  { %v262_v28 = vand.u32 4294901760, %v261_v40  ;;  %v380_v63 = vsub.f32 %v1622_v56, %v1926_v49  ;;  %v268_v39 = vsub.f32 %v1627_v42, %v1977_v30  ;;  %v1931_v49 = vand.u32 4294901760, %v1650_v58 }
  0x2a   :  { %1975 = vst [vmem:[#allocation25_spill] sm:$0xff] %v1636_v55  ;;  %1976 = vst [vmem:[#allocation26_spill] sm:$0xff] %v1638_v27  ;;  %v1653_v45 = vsub.f32 %v58_v35, %v1636_v55  ;;  %v1656_v51 = vsub.f32 %v54_v20, %v1638_v27  ;;  %398 = vmatprep.mubr.f32.mxu1 %v1636_v55  ;;  %987 = vmatprep.subr.mxu1 %v374_v21  ;;  %v1979_v55 = vand.u32 4294901760, %v1643_v38 }
  0x2b   :  { %v381_v40 = vand.u32 4294901760, %v380_v63  ;;  %v1670_v35 = vsub.f32 %v1561_v6, %v1585_v61  ;;  %988 = vmatpush3.msra.mxu1 %v262_v28  ;;  %v269_v62 = vand.u32 4294901760, %v268_v39  ;;  %v275_v13 = vsub.f32 %v1650_v58, %v1931_v49 }
  0x2c   :  { %v1936_v20 = vand.u32 4294901760, %v1653_v45  ;;  %v1941_v30 = vand.u32 4294901760, %v1656_v51  ;;  %v387_v63 = vsub.f32 %v1643_v38, %v1979_v55  ;;  %v1940_v21 = vand.u32 4294901760, %v1666_v52 }
  0x2d   :  { %1978 = vst [vmem:[#allocation27_spill] sm:$0xff] %v1670_v35  ;;  %989 = vmatprep.subr.mxu1 %v381_v40  ;;  %v1939_v6 = vand.u32 4294901760, %v1670_v35  ;;  %v276_v55 = vand.u32 4294901760, %v275_v13  ;;  %v1988_v13 = vld [vmem:[#allocation7_spill] sm:$0xff] }
  0x2e   :  { %v160_v61 = vsub.f32 %v1653_v45, %v1936_v20  ;;  %v166_v28 = vsub.f32 %v1656_v51, %v1941_v30  ;;  %990 = vmatpush3.msra.mxu1 %v269_v62  ;;  %v388_v39 = vand.u32 4294901760, %v387_v63  ;;  %v394_v40 = vsub.f32 %v1666_v52, %v1940_v21  ;;  %v1985_v62 = vld [vmem:[#allocation5_spill] sm:$0xff]  ;;  %v1987_v63 = vld [vmem:[#allocation6_spill] sm:$0xff] }
  0x2f   :  { %v282_v49 = vsub.f32 %v1670_v35, %v1939_v6  ;;  %v1993_v6 = vld [vmem:[#allocation13_spill] sm:$0xff]  ;;  %v1994_v21 = vld [vmem:[#allocation14_spill] sm:$0xff]  ;;  %v1995_v30 = vand.u32 4294901760, %v1208_v19  ;;  %v2003_v19 = vld [vmem:[#allocation24_spill] sm:$0xff] }
  0x30   :  { %v161_v54 = vand.u32 4294901760, %v160_v61  ;;  %v167_v8 = vand.u32 4294901760, %v166_v28  ;;  %991 = vmatprep.subr.mxu1 %v388_v39  ;;  %v395_v20 = vand.u32 4294901760, %v394_v40  ;;  %v1980_v61 = vld [vmem:[#allocation15_spill] sm:$0xff]  ;;  %v1989_v28 = vld [vmem:[#allocation8_spill] sm:$0xff]  ;;  %v1990_v39 = vld [vmem:[#allocation9_spill] sm:$0xff] }
  0x31   :  { %992 = vmatpush3.msra.mxu1 %v276_v55  ;;  %v283_v57 = vand.u32 4294901760, %v282_v49  ;;  %v1984_v49 = vld [vmem:[#allocation19_spill] sm:$0xff]  ;;  %v1991_v55 = vld [vmem:[#allocation10_spill] sm:$0xff] }
  0x32   :  { %162 = vmatprep.mubr.f32.mxu0 %v161_v54  ;;  %993 = vmatprep.subr.mxu1 %v395_v20  ;;  %v1981_v54 = vld [vmem:[#allocation3_spill] sm:$0xff]  ;;  %v1986_v20 = vld [vmem:[#allocation21_spill] sm:$0xff] }
  0x33   :  { %168 = vmatmul.mubr.f32.vlgmr.msra.gmra.mxu0 %v167_v8  ;;  %994 = vmatpush3.msra.mxu1 %v283_v57  ;;  %v1982_v57 = vld [vmem:[#allocation17_spill] sm:$0xff]  ;;  %v1983_v8 = vld [vmem:[#allocation4_spill] sm:$0xff]  ;;  %v1992_v40 = vld [vmem:[#allocation11_spill] sm:$0xff] }
  0x34   :  { %999 = vmatpush3.msra.mxu0 %v1230_v24  ;;  %400 = vmatmul.mubr.f32.vlgmr.msra.gmra.mxu1 %v1638_v27  ;;  %v1996_v27 = vand.u32 4294901760, %v1230_v24  ;;  %v2004_v24 = vand.u32 4294901760, %v1284_v41 }
  0x35   :  { %1000 = vmatprep.subr.mxu0 %v1236_v26  ;;  %1033 = vmatprep.subr.mxu1 %v1167_v3 }
  0x36   :  { %1001 = vmatpush3.msra.mxu0 %v1259_v32  ;;  %1034 = vmatpush3.msra.mxu1 %v1169_v4 }
  0x37   :  { %1002 = vmatprep.subr.mxu0 %v1268_v36  ;;  %1035 = vmatprep.subr.mxu1 %v1171_v5 }
  0x38   :  { %1003 = vmatpush3.msra.mxu0 %v1284_v41  ;;  %1036 = vmatpush3.msra.mxu1 %v1182_v9  ;;  %v2011_v41 = vand.u32 4294901760, %v1377_v44 }
  0x39   :  { %1004 = vmatprep.subr.mxu0 %v1298_v46  ;;  %1037 = vmatprep.subr.mxu1 %v1184_v10 }
  0x3a   :  { %1005 = vmatpush3.msra.mxu0 %v1333_v60  ;;  %1038 = vmatpush3.msra.mxu1 %v1186_v11 }
  0x3b   :  { %1006 = vmatprep.subr.mxu0 %v1349_v1  ;;  %1039 = vmatprep.subr.mxu1 %v1200_v16 }
  0x3c   :  { %1007 = vmatpush3.msra.mxu0 %v1363_v12  ;;  %1040 = vmatpush3.msra.mxu1 %v1202_v17 }
  0x3d   :  { %1008 = vmatprep.subr.mxu0 %v1377_v44  ;;  %1041 = vmatprep.subr.mxu1 %v1205_v18  ;;  %v2033_v44 = vld [vmem:[#allocation27_spill] sm:$0xff] }
  0x3e   :  { %1009 = vmatpush3.msra.mxu0 %v1389_v53  ;;  %1042 = vmatpush3.msra.mxu1 %v1227_v23 }
  0x3f   :  { %1010 = vmatprep.subr.mxu0 %v1406_v22  ;;  %1043 = vmatprep.subr.mxu1 %v1233_v25 }
  0x40   :  { %1011 = vmatpush3.msra.mxu0 %v1418_v43  ;;  %1044 = vmatpush3.msra.mxu1 %v1256_v31 }
  0x41   :  { %1012 = vmatprep.subr.mxu0 %v1445_v50  ;;  %1045 = vmatprep.subr.mxu1 %v1262_v33 }
  0x42   :  { %1013 = vmatpush3.msra.mxu0 %v1461_v29  ;;  %1046 = vmatpush3.msra.mxu1 %v1271_v37 }
  0x43   :  { %1014 = vmatprep.subr.mxu0 %v1485_v34  ;;  %1047 = vmatprep.subr.mxu1 %v1981_v54 }
  0x44   :  { %1015 = vmatpush3.msra.mxu0 %v1980_v61  ;;  %1048 = vmatpush3.msra.mxu1 %v1983_v8 }
  0x45   :  { %1016 = vmatprep.subr.mxu0 %v1982_v57  ;;  %1049 = vmatprep.subr.mxu1 %v1985_v62 }
  0x46   :  { %1017 = vmatpush3.msra.mxu0 %v1984_v49  ;;  %1050 = vmatpush3.msra.mxu1 %v1987_v63 }
  0x47   :  { %1018 = vmatprep.subr.mxu0 %v1986_v20  ;;  %1051 = vmatprep.subr.mxu1 %v1988_v13 }
  0x48   :  { %1019 = vmatpush3.msra.mxu0 %v1556_v2  ;;  %1052 = vmatpush3.msra.mxu1 %v1989_v28 }
  0x49   :  { %1020 = vmatprep.subr.mxu0 %v1578_v0  ;;  %1053 = vmatprep.subr.mxu1 %v1990_v39 }
  0x4a   :  { %1021 = vmatpush3.msra.mxu0 %v1589_v59  ;;  %1054 = vmatpush3.msra.mxu1 %v1991_v55 }
  0x4b   :  { %1022 = vmatprep.subr.mxu0 %v1604_v47  ;;  %1055 = vmatprep.subr.mxu1 %v1992_v40 }
  0x4c   :  { %1023 = vmatpush3.msra.mxu0 %v1608_v14  ;;  %535 = vmatprep.mubr.f32.mxu0 %v1653_v45 }
  0x4d   :  { %1024 = vmatprep.subr.mxu0 %v1622_v56  ;;  %1056 = vmatpush3.msra.mxu1 %v1457_v7  ;;  %v1999_v7 = vld [vmem:[#allocation22_spill] sm:$0xff] }
  0x4e   :  { %1025 = vmatpush3.msra.mxu0 %v1627_v42  ;;  %1057 = vmatprep.subr.mxu1 %v1993_v6  ;;  %v1997_v6 = vld [vmem:[#allocation20_spill] sm:$0xff] }
  0x4f   :  { %1026 = vmatprep.subr.mxu0 %v1643_v38  ;;  %1058 = vmatpush3.msra.mxu1 %v1994_v21  ;;  %v1998_v21 = vand.u32 4294901760, %v1236_v26  ;;  %v2006_v26 = vand.u32 4294901760, %v1298_v46  ;;  %v2012_v46 = vand.u32 4294901760, %v1389_v53  ;;  %v2034_v53 = vand.u32 4294901760, %v2033_v44 }
  0x50   :  { %1027 = vmatpush3.msra.mxu0 %v1650_v58  ;;  %1059 = vmatprep.subr.mxu1 %v1504_v15  ;;  %v2000_v15 = vand.u32 4294901760, %v1259_v32  ;;  %v2009_v32 = vand.u32 4294901760, %v1349_v1  ;;  %v2030_v1 = vand.u32 4294901760, %v1650_v58 }
  0x51   :  { %1028 = vmatprep.subr.mxu0 %v1666_v52  ;;  %1060 = vmatpush3.msra.mxu1 %v1516_v48  ;;  %v2002_v48 = vand.u32 4294901760, %v1268_v36  ;;  %v2010_v36 = vand.u32 4294901760, %v1363_v12  ;;  %v2031_v12 = vand.u32 4294901760, %v1666_v52 }
  0x52   :  { %1029 = vmatpush3.msra.mxu0 %v1670_v35  ;;  %1061 = vmatprep.subr.mxu1 %v1997_v6  ;;  %v2001_v35 = vld [vmem:[#allocation23_spill] sm:$0xff] }
  0x53   :  { %538 = vmatmul.mubr.f32.vlgmr.msra.gmra.mxu0 %v1656_v51  ;;  %1068 = vmatprep.subr.mxu0 %v1995_v30  ;;  %v2007_v30 = vand.u32 4294901760, %v1656_v51 }
  0x54   :  { %1069 = vmatpush3.msra.mxu0 %v1996_v27  ;;  %1062 = vmatpush3.msra.mxu1 %v1999_v7  ;;  %v2005_v27 = vand.u32 4294901760, %v1653_v45 }
  0x55   :  { %1070 = vmatprep.subr.mxu0 %v1998_v21  ;;  %1063 = vmatprep.subr.mxu1 %v2001_v35 }
  0x56   :  { %1071 = vmatpush3.msra.mxu0 %v2000_v15  ;;  %1064 = vmatpush3.msra.mxu1 %v2003_v19  ;;  %v2008_v15 = vand.u32 4294901760, %v1333_v60  ;;  %v2029_v60 = vand.u32 4294901760, %v1643_v38  ;;  %v49_v38 = vstv %s1872_s0 }
  0x57   :  { %1072 = vmatprep.subr.mxu0 %v2002_v48  ;;  %642 = vmatprep.mubr.f32.mxu1 %v2005_v27  ;;  %v2036_v48 = vld [vmem:[#allocation26_spill] sm:$0xff] }
  0x58   :  { %1073 = vmatpush3.msra.mxu0 %v2004_v24  ;;  %646 = vmatmul.mubr.f32.vlgmr.msra.gmra.mxu1 %v2007_v30 }
  0x59   :  { %1074 = vmatprep.subr.mxu0 %v2006_v26  ;;  %1103 = vmatprep.subr.mxu1 %v1167_v3  ;;  %v2013_v3 = vand.u32 4294901760, %v1406_v22  ;;  %v2035_v22 = vld [vmem:[#allocation12_spill] sm:$0xff] }
  0x5a   :  { %1075 = vmatpush3.msra.mxu0 %v2008_v15  ;;  %1104 = vmatpush3.msra.mxu1 %v1169_v4  ;;  %v2014_v4 = vand.u32 4294901760, %v1418_v43  ;;  %v2032_v43 = vld [vmem:[#allocation25_spill] sm:$0xff] }
  0x5b   :  { %1076 = vmatprep.subr.mxu0 %v2009_v32  ;;  %1105 = vmatprep.subr.mxu1 %v1171_v5  ;;  %v2015_v5 = vand.u32 4294901760, %v1445_v50  ;;  %v2028_v50 = vand.u32 4294901760, %v1627_v42 }
  0x5c   :  { %1077 = vmatpush3.msra.mxu0 %v2010_v36  ;;  %1106 = vmatpush3.msra.mxu1 %v1182_v9  ;;  %v2016_v9 = vand.u32 4294901760, %v1461_v29  ;;  %v2037_v29 = vld [vmem:[#allocation13_spill] sm:$0xff] }
  0x5d   :  { %1078 = vmatprep.subr.mxu0 %v2011_v41  ;;  %1107 = vmatprep.subr.mxu1 %v1184_v10  ;;  %v2017_v10 = vand.u32 4294901760, %v1485_v34  ;;  %v2026_v34 = vand.u32 4294901760, %v1608_v14 }
  0x5e   :  { %1079 = vmatpush3.msra.mxu0 %v2012_v46  ;;  %1108 = vmatpush3.msra.mxu1 %v1186_v11  ;;  %v2018_v11 = vand.u32 4294901760, %v1980_v61 }
  0x5f   :  { %1080 = vmatprep.subr.mxu0 %v2013_v3  ;;  %1109 = vmatprep.subr.mxu1 %v1200_v16  ;;  %v2019_v16 = vand.u32 4294901760, %v1982_v57 }
  0x60   :  { %1081 = vmatpush3.msra.mxu0 %v2014_v4  ;;  %1110 = vmatpush3.msra.mxu1 %v1202_v17  ;;  %v2020_v17 = vand.u32 4294901760, %v1984_v49 }
  0x61   :  { %1082 = vmatprep.subr.mxu0 %v2015_v5  ;;  %1111 = vmatprep.subr.mxu1 %v1205_v18  ;;  %v2021_v18 = vand.u32 4294901760, %v1986_v20 }
  0x62   :  { %1083 = vmatpush3.msra.mxu0 %v2016_v9  ;;  %1112 = vmatpush3.msra.mxu1 %v1227_v23  ;;  %v2022_v23 = vand.u32 4294901760, %v1556_v2  ;;  %v2038_v2 = vld [vmem:[#allocation14_spill] sm:$0xff] }
  0x63   :  { %1084 = vmatprep.subr.mxu0 %v2017_v10  ;;  %1113 = vmatprep.subr.mxu1 %v1233_v25  ;;  %v2023_v25 = vand.u32 4294901760, %v1578_v0  ;;  %v2039_v0 = vld [vmem:[#allocation16_spill] sm:$0xff] }
  0x64   :  { %1085 = vmatpush3.msra.mxu0 %v2018_v11  ;;  %1114 = vmatpush3.msra.mxu1 %v1256_v31  ;;  %v2024_v31 = vand.u32 4294901760, %v1589_v59  ;;  %v2040_v59 = vld [vmem:[#allocation18_spill] sm:$0xff] }
  0x65   :  { %1086 = vmatprep.subr.mxu0 %v2019_v16  ;;  %1115 = vmatprep.subr.mxu1 %v1262_v33  ;;  %v2025_v33 = vand.u32 4294901760, %v1604_v47 }
  0x66   :  { %1087 = vmatpush3.msra.mxu0 %v2020_v17  ;;  %1116 = vmatpush3.msra.mxu1 %v1271_v37  ;;  %v2027_v37 = vand.u32 4294901760, %v1622_v56 }
  0x67   :  { %1088 = vmatprep.subr.mxu0 %v2021_v18  ;;  %1117 = vmatprep.subr.mxu1 %v1981_v54 }
  0x68   :  { %1089 = vmatpush3.msra.mxu0 %v2022_v23  ;;  %1118 = vmatpush3.msra.mxu1 %v1983_v8 }
  0x69   :  { %1090 = vmatprep.subr.mxu0 %v2023_v25  ;;  %1119 = vmatprep.subr.mxu1 %v1985_v62 }
  0x6a   :  { %1091 = vmatpush3.msra.mxu0 %v2024_v31  ;;  %1120 = vmatpush3.msra.mxu1 %v1987_v63 }
  0x6b   :  { %1092 = vmatprep.subr.mxu0 %v2025_v33  ;;  %1121 = vmatprep.subr.mxu1 %v1988_v13 }
  0x6c   :  { %1093 = vmatpush3.msra.mxu0 %v2026_v34  ;;  %1122 = vmatpush3.msra.mxu1 %v1989_v28 }
  0x6d   :  { %1094 = vmatprep.subr.mxu0 %v2027_v37  ;;  %1123 = vmatprep.subr.mxu1 %v1990_v39 }
  0x6e   :  { %1095 = vmatpush3.msra.mxu0 %v2028_v50  ;;  %1124 = vmatpush3.msra.mxu1 %v1991_v55 }
  0x6f   :  { %1096 = vmatprep.subr.mxu0 %v2029_v60  ;;  %1125 = vmatprep.subr.mxu1 %v1992_v40 }
  0x70   :  { %1097 = vmatpush3.msra.mxu0 %v2030_v1  ;;  %812 = vmatprep.mubr.f32.mxu0 %v2032_v43 }
  0x71   :  { %1098 = vmatprep.subr.mxu0 %v2031_v12  ;;  %1126 = vmatpush3.msra.mxu1 %v2035_v22 }
  0x72   :  { %1099 = vmatpush3.msra.mxu0 %v2034_v53  ;;  %1127 = vmatprep.subr.mxu1 %v2037_v29 }
  0x73   :  { %814 = vmatmul.mubr.f32.vlgmr.msra.gmra.mxu0 %v2036_v48  ;;  %1128 = vmatpush3.msra.mxu1 %v2038_v2 }
  0x74   :  { %916 = vmatprep.mubr.f32.mxu1 %v2032_v43  ;;  %1129 = vmatprep.subr.mxu1 %v2039_v0 }
  0x75   :  { %1130 = vmatpush3.msra.mxu1 %v2040_v59 }
  0x76   :  { %1131 = vmatprep.subr.mxu1 %v1997_v6 }
  0x77   :  { %1132 = vmatpush3.msra.mxu1 %v1999_v7 }
  0x78   :  { %1133 = vmatprep.subr.mxu1 %v2001_v35 }
  0x79   :  { %1134 = vmatpush3.msra.mxu1 %v2003_v19 }
  0x7a   :  { %918 = vmatmul.mubr.f32.vlgmr.msra.gmra.mxu1 %v2036_v48 }
  0xf3   :  { %v960_v47 = vpop.f32.mrf.mxu0 }
  0xf4   :  { %v995_v45 = vpop.f32.mrf.mxu1 }
  0xf5   :  { %v961_v14 = vpop.f32.mrf.mxu0 }
  0xf6   :  { %v996_v42 = vpop.f32.mrf.mxu1  ;;  %v962_v51 = vadd.f32 %v961_v14, %v960_v47 }
  0xf7   :  { %v997_v6 = vadd.f32 %v996_v42, %v995_v45 }
  0xf8   :  { %v170_v7 = vadd.f32 %v962_v51, %v49_v38 }
  0xfa   :  { %v402_v57 = vadd.f32 %v997_v6, %v170_v7 }
 0x113   :  { %v1030_v56 = vpop.f32.mrf.mxu0 }
 0x115   :  { %v1031_v58 = vpop.f32.mrf.mxu0 }
 0x116   :  { %v1032_v61 = vadd.f32 %v1031_v58, %v1030_v56 }
 0x118   :  { %v1065_v52 = vpop.f32.mrf.mxu1  ;;  %v540_v49 = vadd.f32 %v1032_v61, %v402_v57 }
 0x11a   :  { %v1066_v35 = vpop.f32.mrf.mxu1 }
 0x11b   :  { %v1067_v8 = vadd.f32 %v1066_v35, %v1065_v52 }
 0x11d   :  { %v648_v63 = vadd.f32 %v1067_v8, %v540_v49 }
 0x133   :  { %v1100_v21 = vpop.f32.mrf.mxu0 }
 0x135   :  { %v1101_v54 = vpop.f32.mrf.mxu0 }
 0x136   :  { %v1102_v62 = vadd.f32 %v1101_v54, %v1100_v21 }
 0x138   :  { %v816_v28 = vadd.f32 %v1102_v62, %v648_v63 }
 0x13a   :  { %v1135_v20 = vpop.f32.mrf.mxu1 }
 0x13c   :  { %v1136_v13 = vpop.f32.mrf.mxu1 }
 0x13d   :  { %v1137_v39 = vadd.f32 %v1136_v13, %v1135_v20 }
 0x13f   :  { %v920_v55 = vadd.f32 %v1137_v39, %v816_v28 }
 0x141   :  { %923 = vst [vmem:[%s1873_s3] sm:$0x1] %v920_v55 }

</bundles_post_ra>
